<compile_context>
chip_gen: v6e
topology: v6e:2x2x1
jax: 0.10.0
libtpu: 0.0.40
codegen_flags: <defaults>
</compile_context>

<pallas_src>
import functools

import jax
import jax.numpy as jnp
from jax.experimental import pallas as pl
from jax.experimental.pallas import tpu as pltpu

LANE = 128                          # lane width (minor dim)
ACC_ROWS = 8                        # (8,128) f32 accumulator == exactly 1 vreg
CHUNK_ROWS = 512                    # in-kernel compute chunk (bounds temporaries)
MAX_STEP_BYTES = 8 * 1024 * 1024    # combined logits+label HBM bytes per grid step
VMEM_LIMIT_BYTES = 32 * 1024 * 1024 # 16 MiB double-buffered inputs + headroom


def _round_up(x, m):
    return ((x + m - 1) // m) * m


def _focal_pointwise(x, y, alpha, gamma):
    """Numerically-stable focal-loss math: 1 exp + 1 log1p + 1 div per element."""
    x = x.astype(jnp.float32)
    y = y.astype(jnp.float32)
    #   z = exp(-|x|), lp1 = log1p(z)
    #   log(sigmoid(x))     = min(x, 0)  - lp1
    #   log(1 - sigmoid(x)) = min(-x, 0) - lp1
    #   sigmoid(x)          = (x >= 0 ? 1 : z) / (1 + z)
    z = jnp.exp(-jnp.abs(x))
    lp1 = jnp.log1p(z)
    log_probs = jnp.minimum(x, 0.0) - lp1
    log_1_probs = jnp.minimum(-x, 0.0) - lp1
    probs = jnp.where(x >= 0.0, 1.0, z) / (1.0 + z)

    d = y - probs
    g = float(gamma)
    if g == 2.0:
        coeff = -(d * d)                       # default gamma=2: no pow/log/exp
    elif g == 1.0:
        coeff = -jnp.abs(d)
    elif g == 0.0:
        coeff = -jnp.ones_like(d)
    else:
        # |d|^g via exp(g*log|d|); at d==0 this is exp(-inf)=0, the correct limit.
        coeff = -jnp.exp(jnp.float32(g) * jnp.log(jnp.abs(d)))

    loss = (y * alpha) * log_probs + ((1.0 - y) * (1.0 - alpha)) * log_1_probs
    return loss * coeff


def _partial_sum(logits_ref, label_ref, *, nrows, chunk, alpha, gamma):
    """(ACC_ROWS, LANE) f32 focal-loss sum over the first `nrows` rows of the block."""

    def chunk_partial(r0, nr):                      # nr is a static Python int
        x = logits_ref[pl.ds(r0, nr), :]
        y = label_ref[pl.ds(r0, nr), :]
        loss = _focal_pointwise(x, y, alpha, gamma)
        # Fold sublane-groups of 8 with pure VPU adds; single cross-lane reduce
        # happens once in the wrapper on the tiny partial result.
        return jnp.sum(loss.reshape(nr // ACC_ROWS, ACC_ROWS, LANE), axis=0)

    n_full = nrows // chunk
    rem = nrows - n_full * chunk
    acc = jnp.zeros((ACC_ROWS, LANE), jnp.float32)
    if n_full == 1:
        acc = acc + chunk_partial(0, chunk)
    elif n_full > 1:
        def body(c, a):
            r0 = pl.multiple_of(c * chunk, ACC_ROWS)
            return a + chunk_partial(r0, chunk)
        acc = jax.lax.fori_loop(0, n_full, body, acc, unroll=2)
    if rem > 0:
        acc = acc + chunk_partial(n_full * chunk, rem)
    return acc


def _focal_loss_kernel(logits_ref, label_ref, out_ref, *, alpha, gamma, trows,
                       chunk, steps_per_slice, num_blocks, last_rows):
    p = pl.program_id(0)        # parallel slice (megacore split on v7x)
    j = pl.program_id(1)        # sequential reduction steps within the slice
    block_idx = p * steps_per_slice + j

    @pl.when(j == 0)
    def _init():
        out_ref[...] = jnp.zeros_like(out_ref)

    if last_rows == trows:
        # Every real block is full; phantom (padding) steps are skipped entirely.
        @pl.when(block_idx < num_blocks)
        def _full():
            out_ref[...] += _partial_sum(logits_ref, label_ref, nrows=trows,
                                         chunk=chunk, alpha=alpha, gamma=gamma)
    else:
        @pl.when(block_idx < num_blocks - 1)
        def _full():
            out_ref[...] += _partial_sum(logits_ref, label_ref, nrows=trows,
                                         chunk=chunk, alpha=alpha, gamma=gamma)

        # Partial boundary block: only its `last_rows` (static) valid rows are
        # ever read, so no masking is required anywhere.
        @pl.when(block_idx == num_blocks - 1)
        def _last():
            out_ref[...] += _partial_sum(logits_ref, label_ref, nrows=last_rows,
                                         chunk=chunk, alpha=alpha, gamma=gamma)


def focal_loss_v1(logits, label, *, alpha=0.25, gamma=2.0, reduction="mean",
                  max_block_rows=None):
    """Pallas implementation of FocalLossV1.forward (reduction 'mean'/'sum')."""
    if reduction not in ("mean", "sum"):
        # TODO(synk): reduction='none' needs a full elementwise output and is not
        # exposed through this reducing kernel.
        raise NotImplementedError("reduction must be 'mean' or 'sum'")

    total = int(logits.size)

    # Stream inputs in (near-)native dtypes; the f32 upcast happens in VMEM.
    if not jnp.issubdtype(logits.dtype, jnp.floating) or logits.dtype.itemsize > 4:
        logits = logits.astype(jnp.float32)
    if label.dtype == jnp.bool_:
        label = label.astype(jnp.int8)            # 1 B/elem instead of 4
    elif jnp.issubdtype(label.dtype, jnp.floating) and label.dtype.itemsize > 4:
        label = label.astype(jnp.float32)
    elif jnp.issubdtype(label.dtype, jnp.integer) and label.dtype.itemsize > 4:
        label = label.astype(jnp.int32)

    flat_x = logits.reshape(-1)
    flat_y = label.reshape(-1)

    align = ACC_ROWS * LANE                       # 1024 elements
    bulk = (total // align) * align
    tail = total - bulk

    loss_sum = jnp.float32(0.0)
    if tail:
        # <1024 ragged elements: plain jnp, no full-array pad/copy, no in-kernel mask.
        loss_sum = loss_sum + jnp.sum(
            _focal_pointwise(flat_x[bulk:], flat_y[bulk:], alpha, gamma))

    if bulk:
        # No-copy reshape when the size is already 1024-aligned.
        # TODO(synk): when tail > 0 the prefix slice still copies the bulk once;
        # a manual-DMA (memory_space=pl.ANY) path could avoid even that.
        x_src = flat_x if tail == 0 else flat_x[:bulk]
        y_src = flat_y if tail == 0 else flat_y[:bulk]
        rows = bulk // LANE                        # always a multiple of ACC_ROWS
        x2d = x_src.reshape(rows, LANE)
        y2d = y_src.reshape(rows, LANE)

        in_bytes = x2d.dtype.itemsize + y2d.dtype.itemsize
        bytes_per_row = LANE * in_bytes
        if max_block_rows is None:
            granule = CHUNK_ROWS                   # multiple of 32: all dtype tiles ok
            cap = max(granule, (MAX_STEP_BYTES // bytes_per_row) // granule * granule)
        else:
            granule = 32                           # f32/bf16/int8 sublane tiles all ok
            cap = max(granule, (int(max_block_rows) // granule) * granule)

        if rows <= cap:
            trows, num_blocks = rows, 1
        else:
            # Aim for an even block count so both v7x TensorCores stay busy.
            nb_target = 2 * pl.cdiv(rows, 2 * cap)
            trows = min(cap, _round_up(pl.cdiv(rows, nb_target), granule))
            num_blocks = pl.cdiv(rows, trows)
        last_rows = rows - (num_blocks - 1) * trows
        chunk = min(CHUNK_ROWS, trows)

        num_slices = 2 if num_blocks >= 2 else 1
        steps_per_slice = pl.cdiv(num_blocks, num_slices)

        kernel = functools.partial(
            _focal_loss_kernel, alpha=float(alpha), gamma=float(gamma),
            trows=int(trows), chunk=int(chunk), steps_per_slice=int(steps_per_slice),
            num_blocks=int(num_blocks), last_rows=int(last_rows))

        def in_index(p, j):
            # Clamp so a phantom step (odd block count split 2 ways) re-reads the
            # last real block; its contribution is skipped in-kernel via pl.when.
            return (jnp.minimum(p * steps_per_slice + j, num_blocks - 1), 0)

        in_spec = pl.BlockSpec((trows, LANE), in_index)
        out_spec = pl.BlockSpec((ACC_ROWS, LANE), lambda p, j: (p, 0))

        cost = pl.CostEstimate(
            flops=20 * bulk,
            transcendentals=3 * bulk,
            bytes_accessed=bulk * in_bytes + num_slices * ACC_ROWS * LANE * 4)

        partials = pl.pallas_call(
            kernel,
            out_shape=jax.ShapeDtypeStruct((num_slices * ACC_ROWS, LANE), jnp.float32),
            grid_spec=pltpu.PrefetchScalarGridSpec(
                num_scalar_prefetch=0,
                grid=(num_slices, steps_per_slice),
                in_specs=[in_spec, in_spec],
                out_specs=out_spec),
            compiler_params=pltpu.CompilerParams(
                dimension_semantics=("parallel", "arbitrary"),
                vmem_limit_bytes=VMEM_LIMIT_BYTES),
            cost_estimate=cost,
        )(x2d, y2d)
        loss_sum = loss_sum + jnp.sum(partials)   # single tiny cross-lane reduce

    if reduction == "sum":
        return loss_sum
    return loss_sum / jnp.float32(total)


def _focal_loss_ref(logits, label, alpha=0.25, gamma=2.0, reduction="mean"):
    """Pure-JAX reference mirroring the PyTorch module."""
    x = logits.astype(jnp.float32)
    y = label.astype(jnp.float32)
    probs = jax.nn.sigmoid(x)
    coeff = -jnp.power(jnp.abs(y - probs), gamma)
    log_probs = jnp.where(x >= 0, -jnp.log1p(jnp.exp(-x)), x - jnp.log1p(jnp.exp(x)))
    log_1_probs = jnp.where(x >= 0, -x - jnp.log1p(jnp.exp(-x)), -jnp.log1p(jnp.exp(x)))
    loss = y * alpha * log_probs + (1.0 - y) * (1.0 - alpha) * log_1_probs
    loss = loss * coeff
    return jnp.mean(loss) if reduction == "mean" else jnp.sum(loss)


if __name__ == "__main__":
    key = jax.random.PRNGKey(0)
    ks = jax.random.split(key, 8)

    def check(out, ref, rtol=1e-5, atol=1e-6):
        assert jnp.allclose(out, ref, rtol=rtol, atol=atol), (out, ref)

    # 1) Small NCHW example, f32 logits / f32 labels (matches the module docstring use).
    logits = jax.random.normal(ks[0], (2, 4, 16, 16), dtype=jnp.float32)
    label = jax.random.bernoulli(ks[1], 0.5, (2, 4, 16, 16)).astype(jnp.float32)
    out = jax.block_until_ready(focal_loss_v1(logits, label))
    check(out, _focal_loss_ref(logits, label))

    #    gamma != 2 and reduction='sum' paths on the same inputs.
    out = jax.block_until_ready(focal_loss_v1(logits, label, gamma=1.5, reduction="sum"))
    check(out, _focal_loss_ref(logits, label, gamma=1.5, reduction="sum"),
          rtol=1e-5, atol=1e-4)

    # 2) Ragged element count (not a multiple of 1024): kernel bulk + plain-jnp tail.
    logits = jax.random.normal(ks[2], (3, 5, 7, 11), dtype=jnp.float32)
    label = jax.random.bernoulli(ks[3], 0.5, (3, 5, 7, 11)).astype(jnp.float32)
    out = jax.block_until_ready(focal_loss_v1(logits, label))
    check(out, _focal_loss_ref(logits, label))

    # 3) Native narrow dtypes streamed into the kernel (bf16 logits, bool->int8 labels).
    logits = jax.random.normal(ks[4], (2, 4, 32, 32), dtype=jnp.bfloat16)
    label = jax.random.bernoulli(ks[5], 0.5, (2, 4, 32, 32))
    out = jax.block_until_ready(focal_loss_v1(logits, label))
    check(out, _focal_loss_ref(logits.astype(jnp.float32), label.astype(jnp.float32)))

    # 4) Multi-block grid: 2-way TensorCore split, odd block count (one phantom step)
    #    and a partial last block — exercised via a small per-block row cap.
    logits = jax.random.normal(ks[6], (2, 4, 48, 96), dtype=jnp.float32)
    label = jax.random.bernoulli(ks[7], 0.5, (2, 4, 48, 96)).astype(jnp.float32)
    out = jax.block_until_ready(focal_loss_v1(logits, label, max_block_rows=64))
    check(out, _focal_loss_ref(logits, label))

    print("KERNEL_OK")
</pallas_src>

<mosaic_0001>
module attributes {stable_mosaic.version = 11 : i64} {
  func.func @_focal_loss_kernel(%arg0: i32, %arg1: i32, %arg2: memref<16x128xf32, #tpu.memory_space<vmem>>, %arg3: memref<16x128xf32, #tpu.memory_space<vmem>>, %arg4: memref<8x128xf32, #tpu.memory_space<vmem>>) attributes {dimension_semantics = [#tpu.dimension_semantics<parallel>, #tpu.dimension_semantics<arbitrary>], iteration_bounds = array<i64: 1, 1>, scalar_prefetch = 0 : i64, scratch_operands = 0 : i64, tpu.core_type = #tpu.core_type<tc>, window_params = [{transform_indices = @transform_0, window_bounds = array<i64: 16, 128>}, {transform_indices = @transform_1, window_bounds = array<i64: 16, 128>}, {transform_indices = @transform_2, window_bounds = array<i64: 8, 128>}]} {
    %c1_i32 = arith.constant 1 : i32
    %0 = arith.muli %arg0, %c1_i32 : i32
    %1 = arith.addi %0, %arg1 : i32
    %c0_i32 = arith.constant 0 : i32
    %2 = arith.cmpi eq, %arg1, %c0_i32 : i32
    %3 = arith.extui %2 : i1 to i32
    %c0_i32_0 = arith.constant 0 : i32
    %4 = arith.cmpi ne, %3, %c0_i32_0 : i32
    scf.if %4 {
      %cst = arith.constant 0.000000e+00 : f32
      %8 = vector.broadcast %cst : f32 to vector<8x128xf32>
      %c0 = arith.constant 0 : index
      %c0_3 = arith.constant 0 : index
      %9 = vector.load %arg4[%c0, %c0_3] : memref<8x128xf32, #tpu.memory_space<vmem>>, vector<8x128xf32>
      tpu.vector_store %arg4[%c0, %c0_3], %8 {strides = array<i32>} : memref<8x128xf32, #tpu.memory_space<vmem>>, vector<8x128xf32>,
    } else {
    }
    %c1_i32_1 = arith.constant 1 : i32
    %5 = arith.cmpi slt, %1, %c1_i32_1 : i32
    %6 = arith.extui %5 : i1 to i32
    %c0_i32_2 = arith.constant 0 : i32
    %7 = arith.cmpi ne, %6, %c0_i32_2 : i32
    scf.if %7 {
      %c0 = arith.constant 0 : index
      %c0_3 = arith.constant 0 : index
      %8 = vector.load %arg4[%c0, %c0_3] : memref<8x128xf32, #tpu.memory_space<vmem>>, vector<8x128xf32>
      %cst = arith.constant 0.000000e+00 : f32
      %9 = vector.broadcast %cst : f32 to vector<8x128xf32>
      %c0_4 = arith.constant 0 : index
      %c0_5 = arith.constant 0 : index
      %10 = vector.load %arg2[%c0_4, %c0_5] : memref<16x128xf32, #tpu.memory_space<vmem>>, vector<16x128xf32>
      %c0_6 = arith.constant 0 : index
      %c0_7 = arith.constant 0 : index
      %11 = vector.load %arg3[%c0_6, %c0_7] : memref<16x128xf32, #tpu.memory_space<vmem>>, vector<16x128xf32>
      %12 = math.absf %10 : vector<16x128xf32>
      %cst_8 = arith.constant 0.000000e+00 : f32
      %13 = vector.broadcast %cst_8 : f32 to vector<16x128xf32>
      %14 = arith.subf %13, %12 : vector<16x128xf32>
      %15 = math.exp %14 : vector<16x128xf32>
      %16 = math.log1p %15 : vector<16x128xf32>
      %cst_9 = arith.constant 0.000000e+00 : f32
      %17 = vector.broadcast %cst_9 : f32 to vector<16x128xf32>
      %18 = arith.minimumf %10, %17 : vector<16x128xf32>
      %19 = arith.subf %18, %16 : vector<16x128xf32>
      %cst_10 = arith.constant 0.000000e+00 : f32
      %20 = vector.broadcast %cst_10 : f32 to vector<16x128xf32>
      %21 = arith.subf %20, %10 : vector<16x128xf32>
      %cst_11 = arith.constant 0.000000e+00 : f32
      %22 = vector.broadcast %cst_11 : f32 to vector<16x128xf32>
      %23 = arith.minimumf %21, %22 : vector<16x128xf32>
      %24 = arith.subf %23, %16 : vector<16x128xf32>
      %cst_12 = arith.constant 0.000000e+00 : f32
      %25 = vector.broadcast %cst_12 : f32 to vector<16x128xf32>
      %26 = arith.cmpf oge, %10, %25 : vector<16x128xf32>
      %cst_13 = arith.constant 1.000000e+00 : f32
      %27 = vector.broadcast %cst_13 : f32 to vector<16x128xf32>
      %28 = arith.select %26, %27, %15 : vector<16x128xi1>, vector<16x128xf32>
      %cst_14 = arith.constant 1.000000e+00 : f32
      %29 = vector.broadcast %cst_14 : f32 to vector<16x128xf32>
      %30 = arith.addf %29, %15 : vector<16x128xf32>
      %31 = arith.divf %28, %30 : vector<16x128xf32>
      %32 = arith.subf %11, %31 : vector<16x128xf32>
      %33 = arith.mulf %32, %32 : vector<16x128xf32>
      %cst_15 = arith.constant 0.000000e+00 : f32
      %34 = vector.broadcast %cst_15 : f32 to vector<16x128xf32>
      %35 = arith.subf %34, %33 : vector<16x128xf32>
      %cst_16 = arith.constant 2.500000e-01 : f32
      %36 = vector.broadcast %cst_16 : f32 to vector<16x128xf32>
      %37 = arith.mulf %11, %36 : vector<16x128xf32>
      %38 = arith.mulf %37, %19 : vector<16x128xf32>
      %cst_17 = arith.constant 1.000000e+00 : f32
      %39 = vector.broadcast %cst_17 : f32 to vector<16x128xf32>
      %40 = arith.subf %39, %11 : vector<16x128xf32>
      %cst_18 = arith.constant 7.500000e-01 : f32
      %41 = vector.broadcast %cst_18 : f32 to vector<16x128xf32>
      %42 = arith.mulf %40, %41 : vector<16x128xf32>
      %43 = arith.mulf %42, %24 : vector<16x128xf32>
      %44 = arith.addf %38, %43 : vector<16x128xf32>
      %45 = arith.mulf %44, %35 : vector<16x128xf32>
      %46 = vector.shape_cast %45 : vector<16x128xf32> to vector<2x8x128xf32>
      %cst_19 = arith.constant dense<0.000000e+00> : vector<8x128xf32>
      %47 = vector.multi_reduction <add>, %46, %cst_19 [0] : vector<2x8x128xf32> to vector<8x128xf32>
      %48 = arith.addf %9, %47 : vector<8x128xf32>
      %49 = arith.addf %8, %48 : vector<8x128xf32>
      %c0_20 = arith.constant 0 : index
      %c0_21 = arith.constant 0 : index
      %50 = vector.load %arg4[%c0_20, %c0_21] : memref<8x128xf32, #tpu.memory_space<vmem>>, vector<8x128xf32>
      tpu.vector_store %arg4[%c0_20, %c0_21], %49 {strides = array<i32>} : memref<8x128xf32, #tpu.memory_space<vmem>>, vector<8x128xf32>,
    } else {
    }
    return
  }
  func.func @transform_0(%arg0: i32, %arg1: i32) -> (i32, i32) {
    %c1_i32 = arith.constant 1 : i32
    %0 = arith.muli %arg0, %c1_i32 : i32
    %1 = arith.addi %0, %arg1 : i32
    %c0_i32 = arith.constant 0 : i32
    %2 = arith.minsi %1, %c0_i32 : i32
    %c0_i32_0 = arith.constant 0 : i32
    %c0_i32_1 = arith.constant 0 : i32
    return %2, %c0_i32_0 : i32, i32
  }
  func.func @transform_1(%arg0: i32, %arg1: i32) -> (i32, i32) {
    %c1_i32 = arith.constant 1 : i32
    %0 = arith.muli %arg0, %c1_i32 : i32
    %1 = arith.addi %0, %arg1 : i32
    %c0_i32 = arith.constant 0 : i32
    %2 = arith.minsi %1, %c0_i32 : i32
    %c0_i32_0 = arith.constant 0 : i32
    %c0_i32_1 = arith.constant 0 : i32
    return %2, %c0_i32_0 : i32, i32
  }
  func.func @transform_2(%arg0: i32, %arg1: i32) -> (i32, i32) {
    %c0_i32 = arith.constant 0 : i32
    %c0_i32_0 = arith.constant 0 : i32
    return %arg0, %c0_i32 : i32, i32
  }
}

</mosaic_0001>

<bundles_post_ra>
// kernel: tpu_custom_call.1
= control target key start
LH: loop header
LB: loop body
LE: loop exit
PB: predicated region body
PF: predicated region fallthrough
CT: control target
= control target key end

     0   :  { %7 = vsyncpa [#allocation3], 0  ;;  %s278_s0 = inlined_call_operand.hbm [shape: f32[16,128], index: 0, kind: input, shape index: {}]   ;;  %s279_s1 = inlined_call_operand.hbm [shape: f32[16,128], index: 1, kind: input, shape index: {}]   ;;  %s280_s2 = inlined_call_operand.hbm [shape: f32[8,128], index: 2, kind: output, shape index: {}]  }
   0x1   :  { %8 = vsyncpa [#allocation6], 0 }
   0x2   :  { %9 = vsyncpa [#allocation4], 0  ;;  %s249_s9 = smov [#allocation2]  }
   0x3   :  { %s21_s10 = sshll.u32 %s249_s9, 4  ;;  %s22_s10 = int_to_ptr.vmem [resolvable:$true] %s21_s10 }
   0x4   :  { %s191_s11 = scalar_lea.vmem %s22_s10, 256  ;;  %p196_p1 = scmp.lt.s32.totalorder %s22_s10, %s22_s10 }
   0x5   :  { %p192_p0 = scmp.ne.s32.totalorder %s22_s10, %s191_s11  ;;  %p197_p2 = scmp.lt.s32.totalorder %s191_s11, %s191_s11 }
   0x7   :  { %p198_p3 = por %p197_p2, %p196_p1 }
   0x9   :  { %p199_p4 = pnand %p198_p3, %p192_p0 }
   0xb   :  { %202 = shalt.err (!%p199_p4)
}
   0xc   :  { %s250_s12 = smov 128   ;;  %s251_s13 = smov 8  }
   0xd   :  { %27 = dma.hbm_to_vmem [thread:$0]  %s278_s0, 256, %s22_s10, [#allocation3], %s250_s12, %s250_s12, %s251_s13  }
   0xe   :  { %s252_s16 = smov [#allocation5]  }
   0xf   :  { %s39_s17 = sshll.u32 %s252_s16, 4  ;;  %s40_s17 = int_to_ptr.vmem [resolvable:$true] %s39_s17 }
  0x10   :  { %s211_s18 = scalar_lea.vmem %s40_s17, 256  ;;  %p216_p6 = scmp.lt.s32.totalorder %s40_s17, %s40_s17 }
  0x11   :  { %p212_p5 = scmp.ne.s32.totalorder %s40_s17, %s211_s18  ;;  %p217_p7 = scmp.lt.s32.totalorder %s211_s18, %s211_s18 }
  0x13   :  { %p218_p8 = por %p217_p7, %p216_p6 }
  0x15   :  { %p219_p9 = pnand %p218_p8, %p212_p5 }
  0x17   :  { %222 = shalt.err (!%p219_p9)
}
  0x18   :  { %45 = dma.hbm_to_vmem [thread:$0]  %s279_s1, 256, %s40_s17, [#allocation6], %s250_s12, %s250_s12, %s251_s13  }
  0x19   :  { %243 = dma.done.wait [#allocation3], 256  }
  0x1a   :  { %244 = vsyncadd [#allocation3], 4294967040 }
  0x1b   :  { %245 = dma.done.wait [#allocation6], 256  }
  0x1c   :  { %246 = vsyncadd [#allocation6], 4294967040  ;;  %v71_v0 = vld [vmem:[#allocation2] sm:$0xff]  ;;  %v72_v1 = vld [vmem:[#allocation2 + $0x8] sm:$0xff]  ;;  %s253_s0 = smov [#allocation7]  }
  0x1d   :  { %v75_v2 = vand.u32 2147483647, %v71_v0  ;;  %v76_v3 = vand.u32 2147483647, %v72_v1  ;;  %v73_v14 = vld [vmem:[#allocation5] sm:$0xff]  ;;  %v74_v16 = vld [vmem:[#allocation5 + $0x8] sm:$0xff] }
  0x1e   :  { %v105_v19 = vsub.f32 0.0, %v71_v0  ;;  %v106_v21 = vsub.f32 0.0, %v72_v1  ;;  %vm111_vm0 = vcmp.ge.f32.partialorder %v71_v0, 0.0  ;;  %vm112_vm1 = vcmp.ge.f32.partialorder %v72_v1, 0.0  ;;  %s151_s1 = sshll.u32 %s253_s0, 4  ;;  %s152_s1 = int_to_ptr.vmem [resolvable:$true] %s151_s1 }
  0x1f   :  { %v77_v4 = vsub.f32 0.0, %v75_v2  ;;  %v78_v5 = vsub.f32 0.0, %v76_v3  ;;  %v131_v22 = vsub.f32 1.0, %v73_v14  ;;  %v101_v24 = vmin.f32 %v71_v0, 0.0  ;;  %s223_s21 = scalar_lea.vmem %s152_s1, 128  ;;  %p228_p11 = scmp.lt.s32.totalorder %s152_s1, %s152_s1 }
  0x20   :  { %v102_v25 = vmin.f32 %v72_v1, 0.0  ;;  %v132_v26 = vsub.f32 1.0, %v74_v16  ;;  %v107_v29 = vmin.f32 %v105_v19, 0.0  ;;  %v108_v33 = vmin.f32 %v106_v21, 0.0  ;;  %p224_p10 = scmp.ne.s32.totalorder %s152_s1, %s223_s21  ;;  %p229_p12 = scmp.lt.s32.totalorder %s223_s21, %s223_s21 }
  0x21   :  { %v79_v6 = vmul.f32 1.442695, %v77_v4  ;;  %v81_v7 = vmul.f32 1.442695, %v78_v5  ;;  %v127_v37 = vmul.f32 0.25, %v73_v14  ;;  %v133_v38 = vmul.f32 0.75, %v131_v22 }
  0x22   :  { %v128_v42 = vmul.f32 0.25, %v74_v16  ;;  %v134_v43 = vmul.f32 0.75, %v132_v26  ;;  %p230_p13 = por %p229_p12, %p228_p11 }
  0x23   :  { %171 = vpow2.f32 %v79_v6 }
  0x24   :  { %173 = vpow2.f32 %v81_v7  ;;  %p231_p0 = pnand %p230_p13, %p224_p10 }
  0x30   :  { %v172_v8 = vpop.eup %171 }
  0x31   :  { %v174_v9 = vpop.eup %173  ;;  %v83_v10 = vadd.f32 1.0, %v172_v8  ;;  %v86_v12 = vmul.f32 -0.5, %v172_v8  ;;  %v89_v17 = vand.u32 2147483647, %v172_v8  ;;  %v113_v30 = vsel %vm111_vm0, 1.0, %v172_v8 }
  0x32   :  { %v92_v11 = vadd.f32 1.0, %v174_v9  ;;  %v95_v13 = vmul.f32 -0.5, %v174_v9  ;;  %v98_v20 = vand.u32 2147483647, %v174_v9  ;;  %v114_v34 = vsel %vm112_vm1, 1.0, %v174_v9 }
  0x33   :  { %175 = vlog2.f32 %v83_v10  ;;  %v87_v15 = vadd.f32 1.0, %v86_v12  ;;  %vm90_vm2 = vcmp.lt.f32.partialorder %v89_v17, 0.0004427343 }
  0x34   :  { %177 = vlog2.f32 %v92_v11  ;;  %v96_v18 = vadd.f32 1.0, %v95_v13  ;;  %vm99_vm3 = vcmp.lt.f32.partialorder %v98_v20, 0.0004427343 }
  0x35   :  { %179 = vrcp.f32 %v83_v10  ;;  %v88_v23 = vmul.f32 %v172_v8, %v87_v15 }
  0x36   :  { %181 = vrcp.f32 %v92_v11  ;;  %v97_v28 = vmul.f32 %v174_v9, %v96_v18 }
  0x40   :  { %v176_v27 = vpop.eup %175 }
  0x41   :  { %v178_v31 = vpop.eup %177  ;;  %v85_v32 = vmul.f32 0.6931472, %v176_v27 }
  0x42   :  { %v180_v35 = vpop.eup %179  ;;  %v94_v36 = vmul.f32 0.6931472, %v178_v31 }
  0x43   :  { %v182_v39 = vpop.eup %181  ;;  %v91_v40 = vsel %vm90_vm2, %v88_v23, %v85_v32  ;;  %v118_v41 = vmul.f32 %v180_v35, %v113_v30 }
  0x44   :  { %v100_v44 = vsel %vm99_vm3, %v97_v28, %v94_v36  ;;  %v103_v45 = vsub.f32 %v101_v24, %v91_v40  ;;  %v109_v46 = vsub.f32 %v107_v29, %v91_v40  ;;  %v120_v47 = vmul.f32 %v182_v39, %v114_v34 }
  0x45   :  { %v104_v48 = vsub.f32 %v102_v25, %v100_v44  ;;  %v110_v49 = vsub.f32 %v108_v33, %v100_v44  ;;  %v121_v50 = vsub.f32 %v73_v14, %v118_v41 }
  0x46   :  { %v122_v51 = vsub.f32 %v74_v16, %v120_v47  ;;  %v129_v52 = vmul.f32 %v127_v37, %v103_v45  ;;  %v135_v53 = vmul.f32 %v133_v38, %v109_v46 }
  0x47   :  { %v123_v54 = vmul.f32 %v121_v50, %v121_v50  ;;  %v130_v55 = vmul.f32 %v128_v42, %v104_v48  ;;  %v136_v56 = vmul.f32 %v134_v43, %v110_v49 }
  0x48   :  { %v124_v57 = vmul.f32 %v122_v51, %v122_v51  ;;  %v137_v58 = vadd.f32 %v135_v53, %v129_v52 }
  0x49   :  { %v125_v59 = vsub.f32 0.0, %v123_v54  ;;  %v138_v60 = vadd.f32 %v136_v56, %v130_v55 }
  0x4a   :  { %v126_v61 = vsub.f32 0.0, %v124_v57 }
  0x4b   :  { %v139_v62 = vmul.f32 %v137_v58, %v125_v59 }
  0x4c   :  { %v140_v63 = vmul.f32 %v138_v60, %v126_v61 }
  0x4e   :  { %v141_v0 = vadd.f32 %v140_v63, %v139_v62 }
  0x50   :  { %144 = vst [vmem:[#allocation7] sm:$0xff] %v141_v0 }
  0x51   :  { %234 = shalt.err (!%p231_p0)
}
  0x52   :  { %154 = dma.vmem_to_hbm [thread:$0]  %s152_s1, 128, %s280_s2, [#allocation4]  }
  0x53   :  { %247 = dma.done.wait [#allocation4], 128  }
  0x54   :  { %248 = vsyncadd [#allocation4], 4294967168 }
  0x55   :  { %158 = vsyncpa [#allocation3], 1 }
  0x56   :  { %159 = vsyncpa [#allocation6], 1 }
  0x57   :  { %160 = vsyncpa [#allocation4], 1 }

</bundles_post_ra>
